<compile_context>
chip_gen: v7x
topology: tpu7x:2x2x1
jax: 0.10.0
libtpu: 0.0.40
codegen_flags: <defaults>
</compile_context>

<pallas_src>
import jax
import jax.numpy as jnp
from jax import lax
from jax.experimental import pallas as pl
from jax.experimental.pallas import tpu as pltpu


def moe_kernel(scal_ref,              # SMEM (3,): [shared_w, router_w, balancing_coef]
               x_ref,                 # (TB, H)   f32
               noise_ref,             # (TB, E)   f32
               gw1_ref, gb1_ref,      # (H, G), (1, G)      f32
               gw2_ref, gb2_ref,      # (G, E), (1, E)      f32
               sw_ref, sb_ref,        # (H, H) bf16, (1, H) f32
               ewf_ref, ebf_ref,      # (H, E*H) bf16, (1, E*H) f32   (fused experts)
               out_ref,               # (TB, H)   f32
               gate_ref):             # (TB, E)   f32  (gating probs, for loss)
    x = x_ref[...]
    TB, H = x.shape
    E = gw2_ref.shape[1]

    shared_w = scal_ref[0]
    router_w = scal_ref[1]

    # ---- gating network: Linear -> ReLU -> Linear -> softmax (+ noise) ----
    # Kept in f32: these matmuls are tiny (G=E=8) and f32 keeps the top-2
    # selection exactly consistent with the f32 reference.
    h = jnp.dot(x, gw1_ref[...], preferred_element_type=jnp.float32) + gb1_ref[...]
    h = jnp.maximum(h, 0.0)
    logits = jnp.dot(h, gw2_ref[...], preferred_element_type=jnp.float32) + gb2_ref[...]
    m = jnp.max(logits, axis=-1, keepdims=True)
    p = jnp.exp(logits - m)
    gating = p / jnp.sum(p, axis=-1, keepdims=True) + noise_ref[...]       # (TB, E)
    gate_ref[...] = gating

    # ---- top-2 selection + renormalization (argmax w/ lowest-index tie break) ----
    ids = lax.broadcasted_iota(jnp.int32, gating.shape, 1)
    v1 = jnp.max(gating, axis=-1, keepdims=True)
    i1 = jnp.min(jnp.where(gating == v1, ids, E), axis=-1, keepdims=True)
    masked = jnp.where(ids == i1, -jnp.inf, gating)
    v2 = jnp.max(masked, axis=-1, keepdims=True)
    i2 = jnp.min(jnp.where(masked == v2, ids, E), axis=-1, keepdims=True)
    denom = v1 + v2
    combine = jnp.where(ids == i1, v1,
                        jnp.where(ids == i2, v2, 0.0)) / denom             # (TB, E)

    # ---- routed experts, fused: sigmoid(x @ [W_0|...|W_{E-1}] + b) ----
    # One bf16 MXU matmul, lane-dense (E*H = multiple of 128) f32 accumulation.
    x_bf = x.astype(jnp.bfloat16)
    y_all = jnp.dot(x_bf, ewf_ref[...],
                    preferred_element_type=jnp.float32) + ebf_ref[...]     # (TB, E*H)
    y_sig = jax.nn.sigmoid(y_all)

    # Combine: Expert_e(x) = sigmoid(x W_e + b_e) + x, weighted by top-2 gates.
    # Static lane slices + FMAs (VPU); all heavy compute already fused above.
    router_out = jnp.zeros((TB, H), jnp.float32)
    for e in range(E):                                   # static unroll, E small
        y_e = y_sig[:, e * H:(e + 1) * H] + x
        router_out = router_out + combine[:, e:e + 1] * y_e

    # ---- shared expert: sigmoid(x @ W_s + b_s) ----
    shared = jax.nn.sigmoid(
        jnp.dot(x_bf, sw_ref[...], preferred_element_type=jnp.float32) + sb_ref[...])

    out_ref[...] = x + shared_w * shared + router_w * router_out


def moe_forward(x, params, noise, block_b=8):
    gw1, gb1, gw2, gb2, sw, sb, ew, eb, scal = params
    B, H = x.shape
    E = ew.shape[0]
    tb = min(block_b, B)
    assert B % tb == 0, "batch must be divisible by the batch tile"
    nb = B // tb

    # Fuse per-expert weights into a single lane-dense matmul operand:
    #   ewf[k, e*H + h] = ew[e, k, h]   =>   (x @ ewf)[b, e*H + h] = (x @ ew[e])[b, h]
    ewf = jnp.transpose(ew, (1, 0, 2)).reshape(H, E * H).astype(jnp.bfloat16)
    ebf = eb.reshape(1, E * H)
    sw_bf = sw.astype(jnp.bfloat16)

    def resident(arr):          # full 2-D array, same block every grid step
        return pl.BlockSpec(arr.shape, lambda i: (0, 0))

    out, gating = pl.pallas_call(
        moe_kernel,
        grid=(nb,),
        out_shape=(jax.ShapeDtypeStruct((B, H), jnp.float32),
                   jax.ShapeDtypeStruct((B, E), jnp.float32)),
        in_specs=[
            pl.BlockSpec(memory_space=pltpu.MemorySpace.SMEM),   # scal (3,)
            pl.BlockSpec((tb, H), lambda i: (i, 0)),             # x
            pl.BlockSpec((tb, E), lambda i: (i, 0)),             # noise
            resident(gw1), resident(gb1),
            resident(gw2), resident(gb2),
            resident(sw_bf), resident(sb),
            resident(ewf), resident(ebf),
        ],
        out_specs=(pl.BlockSpec((tb, H), lambda i: (i, 0)),
                   pl.BlockSpec((tb, E), lambda i: (i, 0))),
        compiler_params=pltpu.CompilerParams(
            dimension_semantics=("parallel",)),
    )(scal, x, noise, gw1, gb1, gw2, gb2, sw_bf, sb, ewf, ebf)

    # ---- load-balancing gate loss (full-batch reduction, tiny -> plain JAX) ----
    experts_prob = jnp.mean(gating, axis=0)                                 # (E,)
    loss = jnp.mean((1.0 / E - experts_prob) ** 2) * scal[2]
    return out, loss


# ----------------------------- pure-JAX reference -----------------------------
def moe_reference(x, params, noise, top_k=2):
    gw1, gb1, gw2, gb2, sw, sb, ew, eb, scal = params
    E = ew.shape[0]
    hp = lax.Precision.HIGHEST
    h = jnp.maximum(jnp.dot(x, gw1, precision=hp) + gb1, 0.0)
    logits = jnp.dot(h, gw2, precision=hp) + gb2
    gating = jax.nn.softmax(logits, axis=-1) + noise
    topv, topi = lax.top_k(gating, top_k)
    topw = topv / jnp.sum(topv, axis=-1, keepdims=True)
    router = jnp.zeros_like(x)
    for k in range(top_k):
        idx = topi[:, k]                                   # (B,)
        w = topw[:, k]                                     # (B,)
        we = ew[idx]                                       # (B, H, H)
        be = eb[idx][:, 0, :]                              # (B, H)
        y = jax.nn.sigmoid(jnp.einsum('bh,bho->bo', x, we, precision=hp) + be) + x
        router = router + w[:, None] * y
    shared = jax.nn.sigmoid(jnp.dot(x, sw, precision=hp) + sb)
    out = x + scal[0] * shared + scal[1] * router
    experts_prob = jnp.mean(gating, axis=0)
    loss = jnp.mean((1.0 / E - experts_prob) ** 2) * scal[2]
    return out, loss


def linear_init(key, fan_in, fan_out):
    k1, k2 = jax.random.split(key)
    bound = 1.0 / (fan_in ** 0.5)
    w = jax.random.uniform(k1, (fan_in, fan_out), jnp.float32, -bound, bound)
    b = jax.random.uniform(k2, (1, fan_out), jnp.float32, -bound, bound)
    return w, b


if __name__ == "__main__":
    B, H, G, E = 8, 64, 8, 8          # batch, hidden_dim, gating_dim, n_experts
    key = jax.random.PRNGKey(0)
    keys = jax.random.split(key, 8)

    x = jax.random.normal(keys[0], (B, H), jnp.float32)

    gw1, gb1 = linear_init(keys[1], H, G)          # gate layer 1
    gw2, gb2 = linear_init(keys[2], G, E)          # gate layer 2
    sw, sb = linear_init(keys[3], H, H)            # shared expert

    ew_list, eb_list = [], []
    ekeys = jax.random.split(keys[4], E)
    for e in range(E):
        w_e, b_e = linear_init(ekeys[e], H, H)
        ew_list.append(w_e)
        eb_list.append(b_e)
    ew = jnp.stack(ew_list, axis=0)                # (E, H, H)
    eb = jnp.stack(eb_list, axis=0)                # (E, 1, H)

    # [shared_expert_weight, router_experts_weight, balancing_coef]
    scal = jnp.array([1.0, 1.0, 0.01], jnp.float32)

    # gating noise (randn * gating_noise_std), generated deterministically here
    # (in-module torch.randn has no deterministic Pallas equivalent, so it is
    # passed in as a precomputed input)
    noise = jax.random.normal(keys[5], (B, E), jnp.float32) * 0.01

    params = (gw1, gb1, gw2, gb2, sw, sb, ew, eb, scal)

    out, loss = jax.block_until_ready(moe_forward(x, params, noise))

    ref_out, ref_loss = moe_reference(x, params, noise)
    assert jnp.allclose(out, ref_out, atol=1e-2, rtol=1e-2), "final_out mismatch"
    assert jnp.allclose(loss, ref_loss, atol=1e-7, rtol=5e-2), "gate_loss mismatch"

    print("KERNEL_OK")
</pallas_src>

<mosaic_0001>
module attributes {stable_mosaic.version = 11 : i64} {
  func.func @moe_kernel(%arg0: i32, %arg1: memref<3xf32, #tpu.memory_space<smem>>, %arg2: memref<8x64xf32, #tpu.memory_space<vmem>>, %arg3: memref<8x8xf32, #tpu.memory_space<vmem>>, %arg4: memref<64x8xf32, #tpu.memory_space<vmem>>, %arg5: memref<1x8xf32, #tpu.memory_space<vmem>>, %arg6: memref<8x8xf32, #tpu.memory_space<vmem>>, %arg7: memref<1x8xf32, #tpu.memory_space<vmem>>, %arg8: memref<64x64xbf16, #tpu.memory_space<vmem>>, %arg9: memref<1x64xf32, #tpu.memory_space<vmem>>, %arg10: memref<64x512xbf16, #tpu.memory_space<vmem>>, %arg11: memref<1x512xf32, #tpu.memory_space<vmem>>, %arg12: memref<8x64xf32, #tpu.memory_space<vmem>>, %arg13: memref<8x8xf32, #tpu.memory_space<vmem>>) attributes {dimension_semantics = [#tpu.dimension_semantics<parallel>], iteration_bounds = array<i64: 1>, scalar_prefetch = 0 : i64, scratch_operands = 0 : i64, tpu.core_type = #tpu.core_type<tc>, window_params = [{transform_indices = @transform_0, window_bounds = array<i64: 3>}, {transform_indices = @transform_1, window_bounds = array<i64: 8, 64>}, {transform_indices = @transform_2, window_bounds = array<i64: 8, 8>}, {pipeline_mode = #tpu.pipeline_mode<synchronous>, transform_indices = @transform_3, window_bounds = array<i64: 64, 8>}, {pipeline_mode = #tpu.pipeline_mode<synchronous>, transform_indices = @transform_4, window_bounds = array<i64: 1, 8>}, {pipeline_mode = #tpu.pipeline_mode<synchronous>, transform_indices = @transform_5, window_bounds = array<i64: 8, 8>}, {pipeline_mode = #tpu.pipeline_mode<synchronous>, transform_indices = @transform_6, window_bounds = array<i64: 1, 8>}, {pipeline_mode = #tpu.pipeline_mode<synchronous>, transform_indices = @transform_7, window_bounds = array<i64: 64, 64>}, {pipeline_mode = #tpu.pipeline_mode<synchronous>, transform_indices = @transform_8, window_bounds = array<i64: 1, 64>}, {pipeline_mode = #tpu.pipeline_mode<synchronous>, transform_indices = @transform_9, window_bounds = array<i64: 64, 512>}, {pipeline_mode = #tpu.pipeline_mode<synchronous>, transform_indices = @transform_10, window_bounds = array<i64: 1, 512>}, {transform_indices = @transform_11, window_bounds = array<i64: 8, 64>}, {transform_indices = @transform_12, window_bounds = array<i64: 8, 8>}]} {
    %c0 = arith.constant 0 : index
    %c0_0 = arith.constant 0 : index
    %0 = vector.load %arg2[%c0, %c0_0] : memref<8x64xf32, #tpu.memory_space<vmem>>, vector<8x64xf32>
    %c0_1 = arith.constant 0 : index
    %1 = memref.load %arg1[%c0_1] : memref<3xf32, #tpu.memory_space<smem>>
    %c1 = arith.constant 1 : index
    %2 = memref.load %arg1[%c1] : memref<3xf32, #tpu.memory_space<smem>>
    %c0_2 = arith.constant 0 : index
    %c0_3 = arith.constant 0 : index
    %3 = vector.load %arg4[%c0_2, %c0_3] : memref<64x8xf32, #tpu.memory_space<vmem>>, vector<64x8xf32>
    %cst = arith.constant dense<0.000000e+00> : vector<8x8xf32>
    %4 = tpu.matmul %0, %3, %cst {dimension_numbers = #tpu.dot_dimension_numbers<[1], [0], [0], [1], [0, 0, 1, 1], [], []>} : vector<8x64xf32>, vector<64x8xf32>, vector<8x8xf32> -> vector<8x8xf32>
    %c0_4 = arith.constant 0 : index
    %c0_5 = arith.constant 0 : index
    %5 = vector.load %arg5[%c0_4, %c0_5] : memref<1x8xf32, #tpu.memory_space<vmem>>, vector<1x8xf32>
    %6 = vector.broadcast %5 : vector<1x8xf32> to vector<8x8xf32>
    %7 = arith.addf %4, %6 : vector<8x8xf32>
    %cst_6 = arith.constant 0.000000e+00 : f32
    %8 = vector.broadcast %cst_6 : f32 to vector<8x8xf32>
    %9 = arith.maximumf %7, %8 : vector<8x8xf32>
    %c0_7 = arith.constant 0 : index
    %c0_8 = arith.constant 0 : index
    %10 = vector.load %arg6[%c0_7, %c0_8] : memref<8x8xf32, #tpu.memory_space<vmem>>, vector<8x8xf32>
    %cst_9 = arith.constant dense<0.000000e+00> : vector<8x8xf32>
    %11 = tpu.matmul %9, %10, %cst_9 {dimension_numbers = #tpu.dot_dimension_numbers<[1], [0], [0], [1], [0, 0, 1, 1], [], []>} : vector<8x8xf32>, vector<8x8xf32>, vector<8x8xf32> -> vector<8x8xf32>
    %c0_10 = arith.constant 0 : index
    %c0_11 = arith.constant 0 : index
    %12 = vector.load %arg7[%c0_10, %c0_11] : memref<1x8xf32, #tpu.memory_space<vmem>>, vector<1x8xf32>
    %13 = vector.broadcast %12 : vector<1x8xf32> to vector<8x8xf32>
    %14 = arith.addf %11, %13 : vector<8x8xf32>
    %cst_12 = arith.constant dense<0xFF800000> : vector<8xf32>
    %15 = vector.multi_reduction <maximumf>, %14, %cst_12 [1] : vector<8x8xf32> to vector<8xf32>
    %16 = vector.shape_cast %15 : vector<8xf32> to vector<8x1xf32>
    %17 = vector.broadcast %16 : vector<8x1xf32> to vector<8x8xf32>
    %18 = arith.subf %14, %17 : vector<8x8xf32>
    %19 = math.exp %18 : vector<8x8xf32>
    %cst_13 = arith.constant dense<0.000000e+00> : vector<8xf32>
    %20 = vector.multi_reduction <add>, %19, %cst_13 [1] : vector<8x8xf32> to vector<8xf32>
    %21 = vector.shape_cast %20 : vector<8xf32> to vector<8x1xf32>
    %22 = vector.broadcast %21 : vector<8x1xf32> to vector<8x8xf32>
    %23 = arith.divf %19, %22 : vector<8x8xf32>
    %c0_14 = arith.constant 0 : index
    %c0_15 = arith.constant 0 : index
    %24 = vector.load %arg3[%c0_14, %c0_15] : memref<8x8xf32, #tpu.memory_space<vmem>>, vector<8x8xf32>
    %25 = arith.addf %23, %24 : vector<8x8xf32>
    %c0_16 = arith.constant 0 : index
    %c0_17 = arith.constant 0 : index
    %26 = vector.load %arg13[%c0_16, %c0_17] : memref<8x8xf32, #tpu.memory_space<vmem>>, vector<8x8xf32>
    tpu.vector_store %arg13[%c0_16, %c0_17], %25 {strides = array<i32>} : memref<8x8xf32, #tpu.memory_space<vmem>>, vector<8x8xf32>,
    %27 = tpu.iota {dimensions = array<i32: 1>} : vector<8x8xi32>
    %cst_18 = arith.constant dense<0xFF800000> : vector<8xf32>
    %28 = vector.multi_reduction <maximumf>, %25, %cst_18 [1] : vector<8x8xf32> to vector<8xf32>
    %29 = vector.shape_cast %28 : vector<8xf32> to vector<8x1xf32>
    %30 = vector.broadcast %29 : vector<8x1xf32> to vector<8x8xf32>
    %31 = arith.cmpf oeq, %25, %30 : vector<8x8xf32>
    %c8_i32 = arith.constant 8 : i32
    %32 = vector.broadcast %c8_i32 : i32 to vector<8x8xi32>
    %33 = arith.select %31, %27, %32 : vector<8x8xi1>, vector<8x8xi32>
    %cst_19 = arith.constant dense<2147483647> : vector<8xi32>
    %34 = vector.multi_reduction <minsi>, %33, %cst_19 [1] : vector<8x8xi32> to vector<8xi32>
    %35 = vector.shape_cast %34 : vector<8xi32> to vector<8x1xi32>
    %36 = vector.broadcast %35 : vector<8x1xi32> to vector<8x8xi32>
    %37 = arith.cmpi eq, %27, %36 : vector<8x8xi32>
    %cst_20 = arith.constant 0xFF800000 : f32
    %38 = vector.broadcast %cst_20 : f32 to vector<8x8xf32>
    %39 = arith.select %37, %38, %25 : vector<8x8xi1>, vector<8x8xf32>
    %cst_21 = arith.constant dense<0xFF800000> : vector<8xf32>
    %40 = vector.multi_reduction <maximumf>, %39, %cst_21 [1] : vector<8x8xf32> to vector<8xf32>
    %41 = vector.shape_cast %40 : vector<8xf32> to vector<8x1xf32>
    %42 = vector.broadcast %41 : vector<8x1xf32> to vector<8x8xf32>
    %43 = arith.cmpf oeq, %39, %42 : vector<8x8xf32>
    %c8_i32_22 = arith.constant 8 : i32
    %44 = vector.broadcast %c8_i32_22 : i32 to vector<8x8xi32>
    %45 = arith.select %43, %27, %44 : vector<8x8xi1>, vector<8x8xi32>
    %cst_23 = arith.constant dense<2147483647> : vector<8xi32>
    %46 = vector.multi_reduction <minsi>, %45, %cst_23 [1] : vector<8x8xi32> to vector<8xi32>
    %47 = vector.shape_cast %46 : vector<8xi32> to vector<8x1xi32>
    %48 = arith.addf %29, %41 : vector<8x1xf32>
    %49 = vector.broadcast %35 : vector<8x1xi32> to vector<8x8xi32>
    %50 = arith.cmpi eq, %27, %49 : vector<8x8xi32>
    %51 = vector.broadcast %47 : vector<8x1xi32> to vector<8x8xi32>
    %52 = arith.cmpi eq, %27, %51 : vector<8x8xi32>
    %cst_24 = arith.constant 0.000000e+00 : f32
    %53 = vector.shape_cast %41 : vector<8x1xf32> to vector<8x1xf32>
    %54 = vector.broadcast %53 : vector<8x1xf32> to vector<8x8xf32>
    %55 = vector.broadcast %cst_24 : f32 to vector<8x8xf32>
    %56 = arith.select %52, %54, %55 : vector<8x8xi1>, vector<8x8xf32>
    %57 = vector.shape_cast %29 : vector<8x1xf32> to vector<8x1xf32>
    %58 = vector.broadcast %57 : vector<8x1xf32> to vector<8x8xf32>
    %59 = arith.select %50, %58, %56 : vector<8x8xi1>, vector<8x8xf32>
    %60 = vector.broadcast %48 : vector<8x1xf32> to vector<8x8xf32>
    %61 = arith.divf %59, %60 : vector<8x8xf32>
    %62 = arith.truncf %0 : vector<8x64xf32> to vector<8x64xbf16>
    %c0_25 = arith.constant 0 : index
    %c0_26 = arith.constant 0 : index
    %63 = vector.load %arg10[%c0_25, %c0_26] : memref<64x512xbf16, #tpu.memory_space<vmem>>, vector<64x512xbf16>
    %cst_27 = arith.constant dense<0.000000e+00> : vector<8x512xf32>
    %64 = tpu.matmul %62, %63, %cst_27 {dimension_numbers = #tpu.dot_dimension_numbers<[1], [0], [0], [1], [0, 0, 1, 1], [], []>} : vector<8x64xbf16>, vector<64x512xbf16>, vector<8x512xf32> -> vector<8x512xf32>
    %c0_28 = arith.constant 0 : index
    %c0_29 = arith.constant 0 : index
    %65 = vector.load %arg11[%c0_28, %c0_29] : memref<1x512xf32, #tpu.memory_space<vmem>>, vector<1x512xf32>
    %66 = vector.broadcast %65 : vector<1x512xf32> to vector<8x512xf32>
    %67 = arith.addf %64, %66 : vector<8x512xf32>
    %68 = arith.negf %67 : vector<8x512xf32>
    %69 = math.exp %68 : vector<8x512xf32>
    %cst_30 = arith.constant 1.000000e+00 : f32
    %70 = vector.broadcast %cst_30 : f32 to vector<8x512xf32>
    %71 = arith.addf %70, %69 : vector<8x512xf32>
    %72 = arith.divf %70, %71 : vector<8x512xf32>
    %cst_31 = arith.constant 0.000000e+00 : f32
    %73 = vector.broadcast %cst_31 : f32 to vector<8x64xf32>
    %74 = vector.extract_strided_slice %72 {offsets = [0, 0], sizes = [8, 64], strides = [1, 1]} : vector<8x512xf32> to vector<8x64xf32>
    %75 = arith.addf %74, %0 : vector<8x64xf32>
    %76 = vector.extract_strided_slice %61 {offsets = [0, 0], sizes = [8, 1], strides = [1, 1]} : vector<8x8xf32> to vector<8x1xf32>
    %77 = vector.broadcast %76 : vector<8x1xf32> to vector<8x64xf32>
    %78 = arith.mulf %77, %75 : vector<8x64xf32>
    %79 = arith.addf %73, %78 : vector<8x64xf32>
    %80 = vector.extract_strided_slice %72 {offsets = [0, 64], sizes = [8, 64], strides = [1, 1]} : vector<8x512xf32> to vector<8x64xf32>
    %81 = arith.addf %80, %0 : vector<8x64xf32>
    %82 = vector.extract_strided_slice %61 {offsets = [0, 1], sizes = [8, 1], strides = [1, 1]} : vector<8x8xf32> to vector<8x1xf32>
    %83 = vector.broadcast %82 : vector<8x1xf32> to vector<8x64xf32>
    %84 = arith.mulf %83, %81 : vector<8x64xf32>
    %85 = arith.addf %79, %84 : vector<8x64xf32>
    %86 = vector.extract_strided_slice %72 {offsets = [0, 128], sizes = [8, 64], strides = [1, 1]} : vector<8x512xf32> to vector<8x64xf32>
    %87 = arith.addf %86, %0 : vector<8x64xf32>
    %88 = vector.extract_strided_slice %61 {offsets = [0, 2], sizes = [8, 1], strides = [1, 1]} : vector<8x8xf32> to vector<8x1xf32>
    %89 = vector.broadcast %88 : vector<8x1xf32> to vector<8x64xf32>
    %90 = arith.mulf %89, %87 : vector<8x64xf32>
    %91 = arith.addf %85, %90 : vector<8x64xf32>
    %92 = vector.extract_strided_slice %72 {offsets = [0, 192], sizes = [8, 64], strides = [1, 1]} : vector<8x512xf32> to vector<8x64xf32>
    %93 = arith.addf %92, %0 : vector<8x64xf32>
    %94 = vector.extract_strided_slice %61 {offsets = [0, 3], sizes = [8, 1], strides = [1, 1]} : vector<8x8xf32> to vector<8x1xf32>
    %95 = vector.broadcast %94 : vector<8x1xf32> to vector<8x64xf32>
    %96 = arith.mulf %95, %93 : vector<8x64xf32>
    %97 = arith.addf %91, %96 : vector<8x64xf32>
    %98 = vector.extract_strided_slice %72 {offsets = [0, 256], sizes = [8, 64], strides = [1, 1]} : vector<8x512xf32> to vector<8x64xf32>
    %99 = arith.addf %98, %0 : vector<8x64xf32>
    %100 = vector.extract_strided_slice %61 {offsets = [0, 4], sizes = [8, 1], strides = [1, 1]} : vector<8x8xf32> to vector<8x1xf32>
    %101 = vector.broadcast %100 : vector<8x1xf32> to vector<8x64xf32>
    %102 = arith.mulf %101, %99 : vector<8x64xf32>
    %103 = arith.addf %97, %102 : vector<8x64xf32>
    %104 = vector.extract_strided_slice %72 {offsets = [0, 320], sizes = [8, 64], strides = [1, 1]} : vector<8x512xf32> to vector<8x64xf32>
    %105 = arith.addf %104, %0 : vector<8x64xf32>
    %106 = vector.extract_strided_slice %61 {offsets = [0, 5], sizes = [8, 1], strides = [1, 1]} : vector<8x8xf32> to vector<8x1xf32>
    %107 = vector.broadcast %106 : vector<8x1xf32> to vector<8x64xf32>
    %108 = arith.mulf %107, %105 : vector<8x64xf32>
    %109 = arith.addf %103, %108 : vector<8x64xf32>
    %110 = vector.extract_strided_slice %72 {offsets = [0, 384], sizes = [8, 64], strides = [1, 1]} : vector<8x512xf32> to vector<8x64xf32>
    %111 = arith.addf %110, %0 : vector<8x64xf32>
    %112 = vector.extract_strided_slice %61 {offsets = [0, 6], sizes = [8, 1], strides = [1, 1]} : vector<8x8xf32> to vector<8x1xf32>
    %113 = vector.broadcast %112 : vector<8x1xf32> to vector<8x64xf32>
    %114 = arith.mulf %113, %111 : vector<8x64xf32>
    %115 = arith.addf %109, %114 : vector<8x64xf32>
    %116 = vector.extract_strided_slice %72 {offsets = [0, 448], sizes = [8, 64], strides = [1, 1]} : vector<8x512xf32> to vector<8x64xf32>
    %117 = arith.addf %116, %0 : vector<8x64xf32>
    %118 = vector.extract_strided_slice %61 {offsets = [0, 7], sizes = [8, 1], strides = [1, 1]} : vector<8x8xf32> to vector<8x1xf32>
    %119 = vector.broadcast %118 : vector<8x1xf32> to vector<8x64xf32>
    %120 = arith.mulf %119, %117 : vector<8x64xf32>
    %121 = arith.addf %115, %120 : vector<8x64xf32>
    %c0_32 = arith.constant 0 : index
    %c0_33 = arith.constant 0 : index
    %122 = vector.load %arg8[%c0_32, %c0_33] : memref<64x64xbf16, #tpu.memory_space<vmem>>, vector<64x64xbf16>
    %cst_34 = arith.constant dense<0.000000e+00> : vector<8x64xf32>
    %123 = tpu.matmul %62, %122, %cst_34 {dimension_numbers = #tpu.dot_dimension_numbers<[1], [0], [0], [1], [0, 0, 1, 1], [], []>} : vector<8x64xbf16>, vector<64x64xbf16>, vector<8x64xf32> -> vector<8x64xf32>
    %c0_35 = arith.constant 0 : index
    %c0_36 = arith.constant 0 : index
    %124 = vector.load %arg9[%c0_35, %c0_36] : memref<1x64xf32, #tpu.memory_space<vmem>>, vector<1x64xf32>
    %125 = vector.broadcast %124 : vector<1x64xf32> to vector<8x64xf32>
    %126 = arith.addf %123, %125 : vector<8x64xf32>
    %127 = arith.negf %126 : vector<8x64xf32>
    %128 = math.exp %127 : vector<8x64xf32>
    %cst_37 = arith.constant 1.000000e+00 : f32
    %129 = vector.broadcast %cst_37 : f32 to vector<8x64xf32>
    %130 = arith.addf %129, %128 : vector<8x64xf32>
    %131 = arith.divf %129, %130 : vector<8x64xf32>
    %132 = vector.broadcast %1 : f32 to vector<8x64xf32>
    %133 = arith.mulf %132, %131 : vector<8x64xf32>
    %134 = arith.addf %0, %133 : vector<8x64xf32>
    %135 = vector.broadcast %2 : f32 to vector<8x64xf32>
    %136 = arith.mulf %135, %121 : vector<8x64xf32>
    %137 = arith.addf %134, %136 : vector<8x64xf32>
    %c0_38 = arith.constant 0 : index
    %c0_39 = arith.constant 0 : index
    %138 = vector.load %arg12[%c0_38, %c0_39] : memref<8x64xf32, #tpu.memory_space<vmem>>, vector<8x64xf32>
    tpu.vector_store %arg12[%c0_38, %c0_39], %137 {strides = array<i32>} : memref<8x64xf32, #tpu.memory_space<vmem>>, vector<8x64xf32>,
    return
  }
  func.func @transform_0(%arg0: i32) -> i32 {
    %c0_i32 = arith.constant 0 : i32
    %c0_i32_0 = arith.constant 0 : i32
    return %c0_i32 : i32
  }
  func.func @transform_1(%arg0: i32) -> (i32, i32) {
    %c0_i32 = arith.constant 0 : i32
    %c0_i32_0 = arith.constant 0 : i32
    return %arg0, %c0_i32 : i32, i32
  }
  func.func @transform_2(%arg0: i32) -> (i32, i32) {
    %c0_i32 = arith.constant 0 : i32
    %c0_i32_0 = arith.constant 0 : i32
    return %arg0, %c0_i32 : i32, i32
  }
  func.func @transform_3(%arg0: i32) -> (i32, i32) {
    %c0_i32 = arith.constant 0 : i32
    %c0_i32_0 = arith.constant 0 : i32
    %c0_i32_1 = arith.constant 0 : i32
    return %c0_i32, %c0_i32_0 : i32, i32
  }
  func.func @transform_4(%arg0: i32) -> (i32, i32) {
    %c0_i32 = arith.constant 0 : i32
    %c0_i32_0 = arith.constant 0 : i32
    %c0_i32_1 = arith.constant 0 : i32
    return %c0_i32, %c0_i32_0 : i32, i32
  }
  func.func @transform_5(%arg0: i32) -> (i32, i32) {
    %c0_i32 = arith.constant 0 : i32
    %c0_i32_0 = arith.constant 0 : i32
    %c0_i32_1 = arith.constant 0 : i32
    return %c0_i32, %c0_i32_0 : i32, i32
  }
  func.func @transform_6(%arg0: i32) -> (i32, i32) {
    %c0_i32 = arith.constant 0 : i32
    %c0_i32_0 = arith.constant 0 : i32
    %c0_i32_1 = arith.constant 0 : i32
    return %c0_i32, %c0_i32_0 : i32, i32
  }
  func.func @transform_7(%arg0: i32) -> (i32, i32) {
    %c0_i32 = arith.constant 0 : i32
    %c0_i32_0 = arith.constant 0 : i32
    %c0_i32_1 = arith.constant 0 : i32
    return %c0_i32, %c0_i32_0 : i32, i32
  }
  func.func @transform_8(%arg0: i32) -> (i32, i32) {
    %c0_i32 = arith.constant 0 : i32
    %c0_i32_0 = arith.constant 0 : i32
    %c0_i32_1 = arith.constant 0 : i32
    return %c0_i32, %c0_i32_0 : i32, i32
  }
  func.func @transform_9(%arg0: i32) -> (i32, i32) {
    %c0_i32 = arith.constant 0 : i32
    %c0_i32_0 = arith.constant 0 : i32
    %c0_i32_1 = arith.constant 0 : i32
    return %c0_i32, %c0_i32_0 : i32, i32
  }
  func.func @transform_10(%arg0: i32) -> (i32, i32) {
    %c0_i32 = arith.constant 0 : i32
    %c0_i32_0 = arith.constant 0 : i32
    %c0_i32_1 = arith.constant 0 : i32
    return %c0_i32, %c0_i32_0 : i32, i32
  }
  func.func @transform_11(%arg0: i32) -> (i32, i32) {
    %c0_i32 = arith.constant 0 : i32
    %c0_i32_0 = arith.constant 0 : i32
    return %arg0, %c0_i32 : i32, i32
  }
  func.func @transform_12(%arg0: i32) -> (i32, i32) {
    %c0_i32 = arith.constant 0 : i32
    %c0_i32_0 = arith.constant 0 : i32
    return %arg0, %c0_i32 : i32, i32
  }
}

</mosaic_0001>

<bundles_post_ra>
// kernel: tpu_custom_call.1
= control target key start
LH: loop header
LB: loop body
LE: loop exit
PB: predicated region body
PF: predicated region fallthrough
CT: control target
= control target key end

     0   :  { %18 = vsyncpa [#allocation5], 0  ;;  %s1249_s0 = inlined_call_operand.vmem [shape: f32[3], index: 0, kind: input, shape index: {}]   ;;  %s1250_s1 = inlined_call_operand.vmem [shape: f32[8,64], index: 1, kind: input, shape index: {}]   ;;  %s1251_s2 = inlined_call_operand.vmem [shape: f32[8,8], index: 2, kind: input, shape index: {}]   ;;  %s1252_s3 = inlined_call_operand.vmem [shape: f32[64,8], index: 3, kind: input, shape index: {}]   ;;  %s1253_s4 = inlined_call_operand.vmem [shape: f32[1,8], index: 4, kind: input, shape index: {}]   ;;  %s1254_s5 = inlined_call_operand.vmem [shape: f32[8,8], index: 5, kind: input, shape index: {}]   ;;  %s1255_s6 = inlined_call_operand.vmem [shape: f32[1,8], index: 6, kind: input, shape index: {}]   ;;  %s1256_s7 = inlined_call_operand.vmem [shape: bf16[64,64], index: 7, kind: input, shape index: {}]   ;;  %s1257_s8 = inlined_call_operand.vmem [shape: f32[1,64], index: 8, kind: input, shape index: {}]   ;;  %s1258_s9 = inlined_call_operand.hbm [shape: bf16[64,512], index: 9, kind: input, shape index: {}]   ;;  %s1259_s10 = inlined_call_operand.vmem [shape: f32[1,512], index: 10, kind: input, shape index: {}]   ;;  %s1260_s11 = inlined_call_operand.hbm [shape: f32[8,64], index: 11, kind: output, shape index: {0}]   ;;  %s1261_s12 = inlined_call_operand.hbm [shape: f32[8,8], index: 12, kind: output, shape index: {1}]  }
   0x1   :  { %19 = vsyncpa [#allocation3], 0 }
   0x2   :  { %20 = vsyncpa [#allocation4], 0 }
   0x3   :  { %21 = vsyncpa [#allocation9], 0  ;;  %s28_s23 = sshll.u32 %s1249_s0, 4  ;;  %s29_s23 = int_to_ptr.vmem [resolvable:$true] %s28_s23 }
   0x4   :  { %s914_s24 = scalar_lea.vmem %s29_s23, 16  ;;  %p919_p1 = scmp.lt.s32.totalorder %s29_s23, %s29_s23 }
   0x5   :  { %p915_p0 = scmp.ne.s32.totalorder %s29_s23, %s914_s24  ;;  %p920_p2 = scmp.lt.s32.totalorder %s914_s24, %s914_s24 }
   0x7   :  { %p921_p3 = por %p920_p2, %p919_p1 }
   0x9   :  { %p922_p4 = pnand %p921_p3, %p915_p0 }
   0xb   :  { %925 = shalt.err (!%p922_p4)
}
   0xc   :  { %s1000_s25 = smov [#allocation2]   ;;  %s1001_s26 = smov [#allocation6]  }
   0xd   :  { %31 = dma.vmem_to_smem %s29_s23, 16, %s1000_s25, [#allocation5]  }
   0xe   :  { %s53_s27 = sshll.u32 %s1001_s26, 4  ;;  %s926_s30 = scalar_lea.hbm %s1258_s9, 2048  ;;  %s54_s27 = int_to_ptr.vmem [resolvable:$true] %s53_s27 }
   0xf   :  { %p927_p5 = scmp.ne.s32.totalorder %s1258_s9, %s926_s30  ;;  %p930_p6 = scmp.lt.u32.totalorder %s926_s30, %s1258_s9 }
  0x11   :  { %p932_p7 = pnand %p930_p6, %p927_p5 }
  0x13   :  { %935 = shalt.err (!%p932_p7)
}
  0x14   :  { %s936_s16 = scalar_lea.vmem %s54_s27, 2048  ;;  %p941_p9 = scmp.lt.s32.totalorder %s54_s27, %s54_s27 }
  0x15   :  { %p937_p8 = scmp.ne.s32.totalorder %s54_s27, %s936_s16  ;;  %p942_p10 = scmp.lt.s32.totalorder %s936_s16, %s936_s16 }
  0x17   :  { %p943_p11 = por %p942_p10, %p941_p9 }
  0x19   :  { %p944_p12 = pnand %p943_p11, %p937_p8 }
  0x1b   :  { %947 = shalt.err (!%p944_p12)
}
  0x1c   :  { %s1002_s17 = smov 256   ;;  %s1003_s18 = smov 16  }
  0x1d   :  { %59 = dma.hbm_to_vmem [thread:$0]  %s1258_s9, 2048, %s54_s27, [#allocation3], %s1002_s17, %s1002_s17, %s1003_s18  }
  0x1e   :  { %992 = dma.done.wait [#allocation5], 16  }
  0x1f   :  { %993 = vsyncadd [#allocation5], 4294967280 }
  0x20   :  { %994 = dma.done.wait [#allocation3], 2048  }
  0x21   :  { %995 = vsyncadd [#allocation3], 4294965248 }
  0x22   :  { %68 = sfence }
  0x23   :  { %v73_v0 = vld [vmem:[%s1252_s3] sm:$0xff]  ;;  %v74_v1 = vld [vmem:[%s1252_s3 + $0x8] sm:$0xff]  ;;  %v75_v2 = vld [vmem:[%s1252_s3 + $0x10] sm:$0xff]  ;;  %v1004_v3 = vmov 0.0|0.0   ;;  %vm1005_vm0 = vmmov 0   ;;  %v1006_v6 = vmov 0.0   ;;  %v259_v37 = vlaneseq }
  0x24   :  { %821 = vmatprep.subr.bf16.mxu0 %v1004_v3  ;;  %v822_v4 = vpack.c.bf16 %v74_v1, %v73_v0  ;;  %v76_v5 = vld [vmem:[%s1252_s3 + $0x18] sm:$0xff]  ;;  %801 = vmatprep.mubr.msk.f32.mxu0 %vm1005_vm0, %v1006_v6  ;;  %v77_v7 = vld [vmem:[%s1252_s3 + $0x20] sm:$0xff]  ;;  %v78_v9 = vld [vmem:[%s1252_s3 + $0x28] sm:$0xff]  ;;  %vm88_vm1 = vcmask 523264   ;;  %vm171_vm2 = vcmask 64512  }
  0x25   :  { %804 = vmatprep.subr.mxu1 %v1006_v6  ;;  %806 = vmatprep.mubr.msk.f32.mxu1 %vm1005_vm0, %v1006_v6  ;;  %v825_v8 = vpack.c.bf16 %v76_v5, %v75_v2  ;;  %v79_v10 = vld [vmem:[%s1252_s3 + $0x30] sm:$0xff]  ;;  %v80_v11 = vld [vmem:[%s1252_s3 + $0x38] sm:$0xff]  ;;  %v828_v12 = vpack.c.bf16 %v78_v9, %v77_v7  ;;  %v1130_v14 = vld [vmem:[%s1250_s1] sm:$0xff]  ;;  %v1152_v38 = vand.u32 127, %v259_v37  ;;  %v1007_v7 = vmov 0  }
  0x26   :  { %823 = vmatpush3.bf16.msra.mxu0 %v822_v4  ;;  %v831_v13 = vpack.c.bf16 %v80_v11, %v79_v10  ;;  %v163_v15 = vld [vmem:[%s1254_s5] sm:$0xff]  ;;  %v863_v62 = vld [vmem:[#allocation6 + $0x8] ss:$16 sps:$4 sm:$0xff]   ;;  %v865_v63 = vld [vmem:[#allocation6 + $0xc] ss:$16 sps:$4 sm:$0xff]  }
  0x27   :  { %824 = vmatprep.subr.bf16.mxu0 %v1004_v3  ;;  %805 = vmatpush3.msra.mxu1 %v163_v15  ;;  %v736_v16 = vld [vmem:[%s1253_s4] ss:$0 sm:$0xff]  ;;  %v862_v61 = vld [vmem:[#allocation6 + $0x4] ss:$16 sps:$4 sm:$0xff]   ;;  %v871_v1 = vld [vmem:[#allocation6 + $0x2c] ss:$16 sps:$4 sm:$0xff]   ;;  %v309_v15 = vpack.c.bf16 %v1130_v14, %v1130_v14 }
  0x28   :  { %v738_v21 = vld [vmem:[%s1255_s6] ss:$0 sm:$0xff]  ;;  %v868_v0 = vld [vmem:[#allocation6 + $0x24] ss:$16 sps:$4 sm:$0xff]   ;;  %431 = vmatprep.subr.bf16.mxu1 %v862_v61  ;;  %v877_v5 = vld [vmem:[#allocation6 + $0x4c] ss:$16 sps:$4 sm:$0xff]  }
  0x29   :  { %v256_v33 = vld [vmem:[%s1251_s2] sm:$0xff]  ;;  %v875_v9 = vld [vmem:[#allocation6 + $0x48] ss:$16 sps:$4 sm:$0xff]   ;;  %v883_v11 = vld [vmem:[#allocation6 + $0x6c] ss:$16 sps:$4 sm:$0xff]   ;;  %s1008_s2 = smov 64  }
  0x2a   :  { %826 = vmatpush3.bf16.msra.mxu0 %v825_v8  ;;  %v860_v60 = vld [vmem:[#allocation6] ss:$16 sps:$4 sm:$0xff]   ;;  %v874_v4 = vld [vmem:[#allocation6 + $0x44] ss:$16 sps:$4 sm:$0xff]  }
  0x2b   :  { %827 = vmatprep.subr.bf16.mxu0 %v1004_v3  ;;  %v866_v2 = vld [vmem:[#allocation6 + $0x20] ss:$16 sps:$4 sm:$0xff]   ;;  %v880_v10 = vld [vmem:[#allocation6 + $0x64] ss:$16 sps:$4 sm:$0xff]  }
  0x2c   :  { %v872_v8 = vld [vmem:[#allocation6 + $0x40] ss:$16 sps:$4 sm:$0xff]  }
  0x2e   :  { %829 = vmatpush3.bf16.msra.mxu0 %v828_v12  ;;  %v878_v12 = vld [vmem:[#allocation6 + $0x60] ss:$16 sps:$4 sm:$0xff]  }
  0x2f   :  { %830 = vmatprep.subr.bf16.mxu0 %v1004_v3  ;;  %v869_v3 = vld [vmem:[#allocation6 + $0x28] ss:$16 sps:$4 sm:$0xff]  }
  0x32   :  { %832 = vmatpush3.bf16.msra.mxu0 %v831_v13  ;;  %v881_v13 = vld [vmem:[#allocation6 + $0x68] ss:$16 sps:$4 sm:$0xff]  }
  0x33   :  { %472 = vmatprep.subr.bf16.mxu0 %v865_v63 }
  0x35   :  { %802 = vmatmul.mubr.msk.f32.vlgmr.msra.gmra.mrb[0].mxu0 %vm88_vm1, %v1130_v14 }
  0x36   :  { %473 = vmatpush1.bf16.msra.mxu0 %v863_v62  ;;  %504 = vmatprep.mubr.bf16.mxu0 %v1007_v7 }
  0x37   :  { %474 = vmatprep.subr.bf16.mxu0 %v871_v1 }
  0x3a   :  { %475 = vmatpush1.bf16.msra.mxu0 %v869_v3 }
  0x3b   :  { %476 = vmatprep.subr.bf16.mxu0 %v877_v5 }
  0x3e   :  { %477 = vmatpush1.bf16.msra.mxu0 %v875_v9 }
  0x3f   :  { %478 = vmatprep.subr.bf16.mxu0 %v883_v11 }
  0x42   :  { %479 = vmatpush1.bf16.msra.mxu0 %v881_v13 }
  0x45   :  { %757 = vmatmul.mubr.msk.bf16.vlgmr.msra.gmra.mrb[4].mxu0 %vm88_vm1, %v309_v15 }
 0x108   :  { %v158_v17 = vpop.f32.mrb[0].mxu0 }
 0x109   :  { %v159_v18 = vadd.f32 %v736_v16, %v158_v17  ;;  %v803_v19 = vpop.f32.mrb[1].mxu0 }
 0x10b   :  { %v162_v20 = vmax.f32 %v159_v18, 0.0 }
 0x10d   :  { %807 = vmatmul.mubr.msk.f32.vlgmr.msra.gmra.mrb[0].mxu1 %vm171_vm2, %v162_v20  ;;  %v884_v20 = vld [vmem:[%s1256_s7] sm:$0xff]  }
 0x10e   :  { %432 = vmatpush1.bf16.msra.mxu1 %v860_v60  ;;  %463 = vmatprep.mubr.bf16.mxu1 %v1007_v7 }
 0x10f   :  { %433 = vmatprep.subr.bf16.mxu1 %v868_v0 }
 0x112   :  { %434 = vmatpush1.bf16.msra.mxu1 %v866_v2 }
 0x113   :  { %435 = vmatprep.subr.bf16.mxu1 %v874_v4 }
 0x116   :  { %436 = vmatpush1.bf16.msra.mxu1 %v872_v8 }
 0x117   :  { %437 = vmatprep.subr.bf16.mxu1 %v880_v10 }
 0x11a   :  { %438 = vmatpush1.bf16.msra.mxu1 %v878_v12 }
 0x11b   :  { %809 = vmatprep.subr.bf16.mxu1 %v1006_v6 }
 0x11d   :  { %756 = vmatmul.mubr.msk.bf16.vlgmr.msra.gmra.mrb[4].mxu1 %vm88_vm1, %v309_v15 }
 0x11e   :  { %817 = vmatprep.mubr.msk.bf16.mxu1 %vm1005_vm0, %v1006_v6  ;;  %810 = vmatpush3.bf16.msra.mxu1 %v884_v20 }
 0x11f   :  { %811 = vmatprep.subr.bf16.mxu1 %v1006_v6 }
 0x1e0   :  { %v241_v22 = vpop.f32.mrb[0].mxu1 }
 0x1e1   :  { %v242_v23 = vadd.f32 %v738_v21, %v241_v22  ;;  %v808_v24 = vpop.f32.mrb[1].mxu1  ;;  %v1009_v21 = vmov 3   ;;  %v1010_v22 = vmov 1  }
 0x1e2   :  { %852 = vset.pattern.permute.xlu1 %v1009_v21  ;;  %851 = vset.pattern.permute.xlu0 %v1010_v22  ;;  %v886_v24 = vld [vmem:[%s1256_s7 + $0x10] sm:$0xff]  }
 0x1e3   :  { %v245_v25 = vsel %vm171_vm2, %v242_v23, -inf }
 0x1e4   :  { %246 = vmax.xlane.f32.xlu0 %v245_v25  ;;  %v887_v25 = vld [vmem:[%s1256_s7 + $0x18] sm:$0xff]  }
 0x271   :  { %v247_v26 = vpop.xlane.xlu0 %246 }
 0x272   :  { %v248_v27 = vsub.f32 %v242_v23, %v247_v26  ;;  %v885_v23 = vld [vmem:[%s1256_s7 + $0x8] sm:$0xff]   ;;  %v465_v26 = vpop.f32.mrb[4].mxu1 }
 0x273   :  { %812 = vmatpush3.bf16.msra.mxu1 %v885_v23 }
 0x274   :  { %v249_v28 = vmul.f32 1.442695, %v248_v27  ;;  %813 = vmatprep.subr.bf16.mxu1 %v1006_v6  ;;  %v506_v27 = vpop.f32.mrb[4].mxu0 }
 0x276   :  { %888 = vpow2.f32 %v249_v28  ;;  %v467_v28 = vpop.f32.mrb[5].mxu1 }
 0x277   :  { %814 = vmatpush3.bf16.msra.mxu1 %v886_v24 }
 0x278   :  { %815 = vmatprep.subr.bf16.mxu1 %v1006_v6 }
 0x27b   :  { %816 = vmatpush3.bf16.msra.mxu1 %v887_v25 }
 0x27e   :  { %818 = vmatmul.mubr.msk.bf16.vlgmr.msra.gmra.mrb[8].mxu1 %vm88_vm1, %v309_v15 }
 0x280   :  { %v889_v29 = vpop.eup %888 }
 0x281   :  { %v251_v30 = vsel %vm171_vm2, %v889_v29, 0.0 }
 0x282   :  { %252 = vadd.xlane.f32.xlu0 %v251_v30  ;;  %v469_v30 = vpop.f32.mrb[6].mxu1 }
 0x30f   :  { %v253_v31 = vpop.xlane.xlu0 %252 }
 0x310   :  { %890 = vrcp.f32 %v253_v31  ;;  %v470_v31 = vpop.f32.mrb[7].mxu1 }
 0x31a   :  { %v891_v32 = vpop.eup %890 }
 0x31b   :  { %v255_v34 = vmul.f32 %v891_v32, %v889_v29  ;;  %v508_v29 = vpop.f32.mrb[5].mxu0 }
 0x31c   :  { %v510_v32 = vpop.f32.mrb[6].mxu0 }
 0x31d   :  { %v257_v35 = vadd.f32 %v256_v33, %v255_v34  ;;  %v511_v33 = vpop.f32.mrb[7].mxu0 }
 0x31f   :  { %v261_v36 = vsel %vm171_vm2, %v257_v35, -inf  ;;  %258 = vst.msk [vmem:[#allocation8] sm:$0xff] %vm171_vm2, %v257_v35 }
 0x320   :  { %262 = vmax.xlane.f32.xlu1 %v261_v36 }
 0x3ad   :  { %v1154_v39 = vpop.xlane.xlu1 %262 }
 0x3ae   :  { %vm264_vm3 = vcmp.eq.f32.partialorder %v257_v35, %v1154_v39 }
 0x3af   :  { %v265_v40 = vsel %vm264_vm3, %v1152_v38, 8 }
 0x3b0   :  { %v266_v41 = vsel %vm171_vm2, %v265_v40, 2147483647 }
 0x3b1   :  { %v268_v42 = vshra.s32 %v266_v41, 16  ;;  %v267_v44 = vand.u32 65535, %v266_v41 }
 0x3b3   :  { %v270_v43 = vcvt.s32.f32 %v268_v42  ;;  %v269_v46 = vcvt.s32.f32 %v267_v44 }
 0x3b5   :  { %271 = vmin.xlane.f32.xlu1 %v270_v43 }
 0x442   :  { %v272_v45 = vpop.xlane.xlu1 %271 }
 0x443   :  { %vm273_vm4 = vcmp.eq.f32.partialorder %v270_v43, %v272_v45  ;;  %v278_v48 = vcvt.f32.s32 %v272_v45 }
 0x444   :  { %v274_v47 = vsel %vm273_vm4, %v269_v46, inf  ;;  %v1011_v46 = vmov 5  }
 0x445   :  { %275 = vmin.xlane.f32.xlu0 %v274_v47  ;;  %v279_v50 = vshll.u32 %v278_v48, 16  ;;  %v1012_v47 = vmov 6   ;;  %v1013_v48 = vmov 7  }
 0x4d2   :  { %v276_v49 = vpop.xlane.xlu0 %275 }
 0x4d3   :  { %v277_v51 = vcvt.f32.s32 %v276_v49  ;;  %v1014_v49 = vmov 2  }
 0x4d5   :  { %v1159_v52 = vadd.s32 %v279_v50, %v277_v51  ;;  %v326_v51 = vld [vmem:[%s1259_s10] sm:$0xf]  ;;  %s1016_s10 = smov [#allocation8]  }
 0x4d6   :  { %s721_s30 = sshll.u32 %s1016_s10, 4  ;;  %s722_s30 = int_to_ptr.vmem [resolvable:$true] %s721_s30 }
 0x4d7   :  { %vm281_vm5 = vcmp.eq.s32.totalorder %v1152_v38, %v1159_v52  ;;  %s948_s13 = scalar_lea.vmem %s722_s30, 128  ;;  %p953_p0 = scmp.lt.s32.totalorder %s722_s30, %s722_s30 }
 0x4d8   :  { %v282_v53 = vsel %vm281_vm5, -inf, %v257_v35  ;;  %p949_p13 = scmp.ne.s32.totalorder %s722_s30, %s948_s13  ;;  %p954_p1 = scmp.lt.s32.totalorder %s948_s13, %s948_s13 }
 0x4d9   :  { %v283_v54 = vsel %vm171_vm2, %v282_v53, -inf }
 0x4da   :  { %284 = vmax.xlane.f32.xlu1 %v283_v54  ;;  %p955_p2 = por %p954_p1, %p953_p0 }
 0x4dc   :  { %p956_p3 = pnand %p955_p2, %p949_p13 }
 0x567   :  { %v1167_v55 = vpop.xlane.xlu1 %284 }
 0x568   :  { %vm286_vm6 = vcmp.eq.f32.partialorder %v282_v53, %v1167_v55  ;;  %v303_v34 = vadd.f32 %v1167_v55, %v1154_v39 }
 0x569   :  { %v287_v56 = vsel %vm286_vm6, %v1152_v38, 8 }
 0x56a   :  { %v288_v57 = vsel %vm171_vm2, %v287_v56, 2147483647  ;;  %892 = vrcp.f32 %v303_v34 }
 0x56b   :  { %v290_v58 = vshra.s32 %v288_v57, 16  ;;  %v289_v16 = vand.u32 65535, %v288_v57 }
 0x56d   :  { %v292_v59 = vcvt.s32.f32 %v290_v58  ;;  %v291_v18 = vcvt.s32.f32 %v289_v16 }
 0x56f   :  { %293 = vmin.xlane.f32.xlu0 %v292_v59 }
 0x574   :  { %v893_v43 = vpop.eup %892 }
 0x5fc   :  { %v294_v17 = vpop.xlane.xlu0 %293 }
 0x5fd   :  { %vm295_vm7 = vcmp.eq.f32.partialorder %v292_v59, %v294_v17  ;;  %v300_v6 = vcvt.f32.s32 %v294_v17 }
 0x5fe   :  { %v296_v19 = vsel %vm295_vm7, %v291_v18, inf }
 0x5ff   :  { %297 = vmin.xlane.f32.xlu1 %v296_v19  ;;  %v301_v36 = vshll.u32 %v300_v6, 16 }
 0x610   :  { %545 = vrot.lane.b32.xlu1 %v1130_v14, %s1008_s2 }
 0x68c   :  { %v298_v35 = vpop.xlane.xlu1 %297 }
 0x68d   :  { %v299_v40 = vcvt.f32.s32 %v298_v35 }
 0x68f   :  { %v302_v41 = vadd.s32 %v301_v36, %v299_v40 }
 0x690   :  { %v546_v17 = vpop.permute.xlu1 %545 }
 0x691   :  { %vm304_vm8 = vcmp.eq.s32.totalorder %v1152_v38, %v302_v41  ;;  %v1015_v38 = vmov 4  }
 0x692   :  { %v305_v42 = vsel %vm304_vm8, %v1167_v55, 0.0 }
 0x693   :  { %v306_v44 = vsel %vm281_vm5, %v1154_v39, %v305_v42  ;;  %v329_v39 = vshrl.u32 %v259_v37, 7  ;;  %v686_v37 = vpop.f32.mrb[8].mxu1 }
 0x694   :  { %v308_v45 = vmul.f32 %v893_v43, %v306_v44  ;;  %v819_v1 = vpop.f32.mrb[9].mxu1 }
 0x695   :  { %v330_v50 = vsub.s32 0, %v329_v39  ;;  %v334_v53 = vsub.s32 1, %v329_v39  ;;  %v338_v55 = vsub.s32 2, %v329_v39  ;;  %v342_v57 = vsub.s32 3, %v329_v39  ;;  %v689_v3 = vpop.f32.mrb[10].mxu1 }
 0x696   :  { %568 = vperm.xlu1 %852, %v308_v45   ;;  %550 = vperm.xlu0 %851, %v308_v45   ;;  %v820_v4 = vpop.f32.mrb[11].mxu1 }
 0x697   :  { %v331_v52 = vrot.slane %v326_v51, %v330_v50  ;;  %v335_v56 = vrot.slane %v326_v51, %v334_v53  ;;  %v339_v59 = vrot.slane %v326_v51, %v338_v55  ;;  %v343_v61 = vrot.slane %v326_v51, %v342_v57 }
 0x699   :  { %v466_v54 = vadd.f32 %v465_v26, %v331_v52  ;;  %v468_v60 = vadd.f32 %v467_v28, %v335_v56  ;;  %v507_v62 = vadd.f32 %v506_v27, %v339_v59  ;;  %v509_v0 = vadd.f32 %v508_v29, %v343_v61 }
 0x69a   :  { %853 = vset.pattern.permute.xlu1 %v1011_v46  ;;  %858 = vset.pattern.permute.xlu0 %v1012_v47 }
 0x69b   :  { %586 = vperm.xlu1 %853, %v308_v45   ;;  %597 = vperm.xlu0 %858, %v308_v45   ;;  %v758_v58 = vmul.f32 -1.442695, %v466_v54  ;;  %v759_v63 = vmul.f32 -1.442695, %v468_v60  ;;  %v760_v2 = vmul.f32 -1.442695, %v507_v62 }
 0x69c   :  { %v761_v5 = vmul.f32 -1.442695, %v509_v0 }
 0x69d   :  { %894 = vpow2.f32 %v758_v58 }
 0x69e   :  { %896 = vpow2.f32 %v759_v63 }
 0x69f   :  { %854 = vset.pattern.permute.xlu1 %v1013_v48  ;;  %859 = vset.pattern.permute.xlu0 %v1013_v48  ;;  %898 = vpow2.f32 %v760_v2 }
 0x6a0   :  { %604 = vperm.xlu1 %854, %v308_v45   ;;  %900 = vpow2.f32 %v761_v5 }
 0x6a4   :  { %855 = vset.pattern.permute.xlu1 %v1007_v7 }
 0x6a5   :  { %540 = vperm.xlu1 %855, %v308_v45  }
 0x6a7   :  { %v895_v7 = vpop.eup %894 }
 0x6a8   :  { %v525_v8 = vadd.f32 1.0, %v895_v7  ;;  %v897_v9 = vpop.eup %896 }
 0x6a9   :  { %856 = vset.pattern.permute.xlu1 %v1014_v49  ;;  %v526_v10 = vadd.f32 1.0, %v897_v9  ;;  %v899_v11 = vpop.eup %898 }
 0x6aa   :  { %561 = vperm.xlu1 %856, %v308_v45   ;;  %902 = vrcp.f32 %v525_v8  ;;  %v901_v12 = vpop.eup %900  ;;  %v527_v13 = vadd.f32 1.0, %v899_v11 }
 0x6ab   :  { %904 = vrcp.f32 %v526_v10  ;;  %v528_v15 = vadd.f32 1.0, %v901_v12 }
 0x6ac   :  { %906 = vrcp.f32 %v527_v13 }
 0x6ad   :  { %908 = vrcp.f32 %v528_v15 }
 0x6ae   :  { %857 = vset.pattern.permute.xlu1 %v1015_v38 }
 0x6af   :  { %579 = vperm.xlu1 %857, %v308_v45  }
 0x6b4   :  { %v903_v16 = vpop.eup %902 }
 0x6b5   :  { %v548_v18 = vadd.f32 %v903_v16, %v546_v17  ;;  %v905_v19 = vpop.eup %904 }
 0x6b6   :  { %v566_v23 = vadd.f32 %v905_v19, %v546_v17  ;;  %v907_v24 = vpop.eup %906 }
 0x6b7   :  { %v909_v27 = vpop.eup %908  ;;  %v584_v28 = vadd.f32 %v907_v24, %v546_v17 }
 0x6b8   :  { %v602_v30 = vadd.f32 %v909_v27, %v546_v17 }
 0x715   :  { %v551_v20 = vpop.permute.xlu0 %550  ;;  %v569_v21 = vpop.permute.xlu1 %568 }
 0x716   :  { %v553_v22 = vmul.f32 %v551_v20, %v548_v18  ;;  %v571_v25 = vmul.f32 %v569_v21, %v566_v23 }
 0x718   :  { %555 = vrot.lane.b32.xlu1 %v553_v22, %s1008_s2 }
 0x71a   :  { %v587_v26 = vpop.permute.xlu1 %586 }
 0x71b   :  { %v589_v29 = vmul.f32 %v587_v26, %v584_v28 }
 0x71c   :  { %573 = vrot.lane.b32.xlu1 %v571_v25, %s1008_s2 }
 0x71d   :  { %959 = shalt.err (!%p956_p3)
}
 0x71e   :  { %s960_s15 = scalar_lea.hbm %s1261_s12, 128 }
 0x71f   :  { %p961_p4 = scmp.ne.s32.totalorder %s1261_s12, %s960_s15  ;;  %p964_p5 = scmp.lt.u32.totalorder %s960_s15, %s1261_s12 }
 0x721   :  { %p966_p6 = pnand %p964_p5, %p961_p4 }
 0x723   :  { %969 = shalt.err (!%p966_p6)
}
 0x724   :  { %724 = dma.vmem_to_hbm [thread:$0]  %s722_s30, 128, %s1261_s12, [#allocation9]   ;;  %v605_v31 = vpop.permute.xlu1 %604  ;;  %591 = vrot.lane.b32.xlu1 %v589_v29, %s1008_s2  ;;  %v762_v33 = vld [vmem:[%s1257_s8] ss:$0 sm:$0xff]  ;;  %v537_v43 = vadd.f32 %v903_v16, %v1130_v14  ;;  %v559_v45 = vadd.f32 %v905_v19, %v1130_v14  ;;  %v577_v49 = vadd.f32 %v907_v24, %v1130_v14  ;;  %v595_v50 = vadd.f32 %v909_v27, %v1130_v14  ;;  %v598_v54 = vpop.permute.xlu0 %597 }
 0x725   :  { %v607_v32 = vmul.f32 %v605_v31, %v602_v30  ;;  %v687_v34 = vadd.f32 %v762_v33, %v686_v37  ;;  %s71_s12 = sld [smem:[#allocation2]]  ;;  %s735_s8 = sld [smem:[#allocation2 + $0x1]] }
 0x726   :  { %v600_v58 = vmul.f32 %v598_v54, %v595_v50  ;;  %s1017_s22 = smov [#allocation7]  }
 0x727   :  { %609 = vrot.lane.b32.xlu0 %v607_v32, %s1008_s2  ;;  %v768_v6 = vmul.f32 -1.442695, %v687_v34  ;;  %s711_s4 = sshll.u32 %s1017_s22, 4  ;;  %s712_s4 = int_to_ptr.vmem [resolvable:$true] %s711_s4 }
 0x728   :  { %v541_v35 = vpop.permute.xlu1 %540  ;;  %s970_s5 = scalar_lea.vmem %s712_s4, 128  ;;  %p975_p8 = scmp.lt.s32.totalorder %s712_s4, %s712_s4 }
 0x729   :  { %910 = vpow2.f32 %v768_v6  ;;  %v543_v44 = vmul.f32 %v541_v35, %v537_v43  ;;  %p971_p7 = scmp.ne.s32.totalorder %s712_s4, %s970_s5  ;;  %p976_p9 = scmp.lt.s32.totalorder %s970_s5, %s970_s5 }
 0x72b   :  { %v698_v55 = vstv %s71_s12  ;;  %v701_v62 = vstv %s735_s8  ;;  %p977_p10 = por %p976_p9, %p975_p8 }
 0x72c   :  { %v562_v40 = vpop.permute.xlu1 %561 }
 0x72d   :  { %v564_v47 = vmul.f32 %v562_v40, %v559_v45  ;;  %p978_p11 = pnand %p977_p10, %p971_p7 }
 0x730   :  { %v580_v42 = vpop.permute.xlu1 %579 }
 0x731   :  { %v582_v51 = vmul.f32 %v580_v42, %v577_v49 }
 0x733   :  { %v911_v36 = vpop.eup %910 }
 0x734   :  { %v695_v41 = vadd.f32 1.0, %v911_v36 }
 0x736   :  { %912 = vrcp.f32 %v695_v41 }
 0x740   :  { %v913_v53 = vpop.eup %912 }
 0x741   :  { %v699_v60 = vmul.f32 %v913_v53, %v698_v55 }
 0x743   :  { %v700_v37 = vadd.f32 %v699_v60, %v1130_v14 }
 0x78a   :  { %v556_v46 = vpop.permute.xlu1 %555 }
 0x78b   :  { %v558_v48 = vadd.f32 %v556_v46, %v543_v44 }
 0x78d   :  { %v565_v38 = vadd.f32 %v564_v47, %v558_v48 }
 0x78e   :  { %v574_v39 = vpop.permute.xlu1 %573 }
 0x78f   :  { %v576_v52 = vadd.f32 %v574_v39, %v565_v38 }
 0x791   :  { %v583_v56 = vadd.f32 %v582_v51, %v576_v52 }
 0x796   :  { %v592_v57 = vpop.permute.xlu1 %591 }
 0x797   :  { %v594_v59 = vadd.f32 %v592_v57, %v583_v56 }
 0x799   :  { %v601_v61 = vadd.f32 %v600_v58, %v594_v59  ;;  %v610_v63 = vpop.permute.xlu0 %609 }
 0x79b   :  { %v612_v0 = vadd.f32 %v610_v63, %v601_v61 }
 0x79d   :  { %v702_v1 = vmul.f32 %v701_v62, %v612_v0 }
 0x79f   :  { %v703_v2 = vadd.f32 %v702_v1, %v700_v37 }
 0x7a1   :  { %704 = vst.msk [vmem:[#allocation7] sm:$0xff] %vm88_vm1, %v703_v2 }
 0x7a2   :  { %981 = shalt.err (!%p978_p11)
}
 0x7a3   :  { %s982_s23 = scalar_lea.hbm %s1260_s11, 128 }
 0x7a4   :  { %p983_p12 = scmp.ne.s32.totalorder %s1260_s11, %s982_s23  ;;  %p986_p13 = scmp.lt.u32.totalorder %s982_s23, %s1260_s11 }
 0x7a6   :  { %p988_p0 = pnand %p986_p13, %p983_p12 }
 0x7a8   :  { %991 = shalt.err (!%p988_p0)
}
 0x7a9   :  { %714 = dma.vmem_to_hbm [thread:$0]  %s712_s4, 128, %s1260_s11, [#allocation4]  }
 0x7aa   :  { %996 = dma.done.wait [#allocation4], 128  }
 0x7ab   :  { %997 = vsyncadd [#allocation4], 4294967168 }
 0x7ac   :  { %998 = dma.done.wait [#allocation9], 128  }
 0x7ad   :  { %999 = vsyncadd [#allocation9], 4294967168 }
 0x7ae   :  { %731 = vsyncpa [#allocation3], 1 }
 0x7af   :  { %732 = vsyncpa [#allocation4], 1 }
 0x7b0   :  { %733 = vsyncpa [#allocation9], 1 }
 0x7b1   :  { %734 = vsyncpa [#allocation5], 1 }

</bundles_post_ra>
